<compile_context>
chip_gen: v6e
topology: v6e:2x2x1
jax: 0.10.0
libtpu: 0.0.40
codegen_flags: <defaults>
</compile_context>

<pallas_src>
import jax
import jax.numpy as jnp
from jax.experimental import pallas as pl
from jax.experimental.pallas import tpu as pltpu

HIDDEN = 256


def _round_up(x, m):
    return ((x + m - 1) // m) * m


def critic_kernel(s_ref, a_ref, w1s_ref, w1a_ref, b1_ref, w2_ref, b2_ref,
                  w3_ref, b3_ref, out_ref):
    # h1 = relu(state @ W1_s + action @ W1_a + b1)     (TB, 256)
    h1 = (jnp.dot(s_ref[...], w1s_ref[...], preferred_element_type=jnp.float32)
          + jnp.dot(a_ref[...], w1a_ref[...], preferred_element_type=jnp.float32)
          + b1_ref[...])
    h1 = jnp.maximum(h1, 0.0)

    # h2 = relu(h1 @ W2 + b2)                          (TB, 256)
    h2 = jnp.dot(h1, w2_ref[...], preferred_element_type=jnp.float32) + b2_ref[...]
    h2 = jnp.maximum(h2, 0.0)

    # Final layer has N=1: keep it off the MXU — elementwise mul + lane reduce.
    # w3_ref is the (1, 256) weight row; b3 is a scalar in SMEM.
    q1 = jnp.sum(h2 * w3_ref[...], axis=-1, keepdims=True) + b3_ref[0, 0]
    out_ref[...] = q1.astype(out_ref.dtype)            # (TB, 1)


def critic_forward(state, action, params, *, block_b=512):
    """state: (B, state_dim), action: (B, action_dim) -> q1: (B, 1)"""
    w1s, w1a, b1, w2, b2, w3, b3 = params
    B, S = state.shape
    A = action.shape[1]

    # Batch tile: multiple of 8 sublanes, capped by the (padded) batch size.
    tb = min(block_b, _round_up(B, 8))
    Bp = _round_up(B, tb)
    if Bp != B:
        pad = Bp - B
        state = jnp.pad(state, ((0, pad), (0, 0)))
        action = jnp.pad(action, ((0, pad), (0, 0)))

    grid = (Bp // tb,)

    out = pl.pallas_call(
        critic_kernel,
        out_shape=jax.ShapeDtypeStruct((Bp, 1), jnp.float32),
        grid=grid,
        in_specs=[
            # Activations: tiled along the batch axis.
            pl.BlockSpec((tb, S), lambda i: (i, 0)),
            pl.BlockSpec((tb, A), lambda i: (i, 0)),
            # Weights / biases: constant index_map -> VMEM-resident across steps.
            pl.BlockSpec((S, HIDDEN), lambda i: (0, 0)),
            pl.BlockSpec((A, HIDDEN), lambda i: (0, 0)),
            pl.BlockSpec((1, HIDDEN), lambda i: (0, 0)),
            pl.BlockSpec((HIDDEN, HIDDEN), lambda i: (0, 0)),
            pl.BlockSpec((1, HIDDEN), lambda i: (0, 0)),
            pl.BlockSpec((1, HIDDEN), lambda i: (0, 0)),
            # Scalar bias of the last layer lives in SMEM (no (8,128) VMEM tile).
            pl.BlockSpec((1, 1), lambda i: (0, 0),
                         memory_space=pltpu.MemorySpace.SMEM),
        ],
        out_specs=pl.BlockSpec((tb, 1), lambda i: (i, 0)),
        compiler_params=pltpu.CompilerParams(
            dimension_semantics=("parallel",)),
    )(state, action, w1s, w1a, b1, w2, b2, w3, b3)

    return out[:B]


def init_linear(key, fan_in, fan_out):
    # Matches torch.nn.Linear default init: U(-1/sqrt(fan_in), 1/sqrt(fan_in)).
    kw, kb = jax.random.split(key)
    bound = 1.0 / jnp.sqrt(jnp.float32(fan_in))
    w = jax.random.uniform(kw, (fan_in, fan_out), jnp.float32, -bound, bound)
    b = jax.random.uniform(kb, (1, fan_out), jnp.float32, -bound, bound)
    return w, b


def make_params(key, state_dim, action_dim):
    k1, k2, k3 = jax.random.split(key, 3)
    # Layer 1 initialized as a single (S+A, 256) Linear, then split by rows so
    # the kernel can consume state/action without a host-side concat.
    w1, b1 = init_linear(k1, state_dim + action_dim, HIDDEN)
    w1s, w1a = w1[:state_dim], w1[state_dim:]
    w2, b2 = init_linear(k2, HIDDEN, HIDDEN)
    w3, b3 = init_linear(k3, HIDDEN, 1)
    w3_row = w3.T                       # (1, 256) row for the VPU reduction
    b3_scalar = b3.reshape(1, 1)        # (1, 1) scalar for SMEM
    return (w1s, w1a, b1, w2, b2, w3_row, b3_scalar)


def reference_forward(state, action, params):
    w1s, w1a, b1, w2, b2, w3, b3 = params
    h1 = jnp.maximum(state @ w1s + action @ w1a + b1, 0.0)
    h2 = jnp.maximum(h1 @ w2 + b2, 0.0)
    return h2 @ w3.T + b3


if __name__ == "__main__":
    key = jax.random.PRNGKey(0)
    k_params, k_state, k_action = jax.random.split(key, 3)

    batch, state_dim, action_dim = 2, 16, 8
    params = make_params(k_params, state_dim, action_dim)
    state = jax.random.normal(k_state, (batch, state_dim), jnp.float32)
    action = jax.random.normal(k_action, (batch, action_dim), jnp.float32)

    q1 = jax.jit(critic_forward)(state, action, params)
    q1 = jax.block_until_ready(q1)

    q1_ref = reference_forward(state, action, params)
    assert q1.shape == (batch, 1), q1.shape
    assert jnp.allclose(q1, q1_ref, atol=1e-4, rtol=1e-4), (q1, q1_ref)

    print("KERNEL_OK")
</pallas_src>

<mosaic_0001>
module attributes {stable_mosaic.version = 11 : i64} {
  func.func @critic_kernel(%arg0: i32, %arg1: memref<8x16xf32, #tpu.memory_space<vmem>>, %arg2: memref<8x8xf32, #tpu.memory_space<vmem>>, %arg3: memref<16x256xf32, #tpu.memory_space<vmem>>, %arg4: memref<8x256xf32, #tpu.memory_space<vmem>>, %arg5: memref<1x256xf32, #tpu.memory_space<vmem>>, %arg6: memref<256x256xf32, #tpu.memory_space<vmem>>, %arg7: memref<1x256xf32, #tpu.memory_space<vmem>>, %arg8: memref<1x256xf32, #tpu.memory_space<vmem>>, %arg9: memref<1x1xf32, #tpu.memory_space<smem>>, %arg10: memref<8x1xf32, #tpu.memory_space<vmem>>) attributes {dimension_semantics = [#tpu.dimension_semantics<parallel>], iteration_bounds = array<i64: 1>, scalar_prefetch = 0 : i64, scratch_operands = 0 : i64, tpu.core_type = #tpu.core_type<tc>, window_params = [{transform_indices = @transform_0, window_bounds = array<i64: 8, 16>}, {transform_indices = @transform_1, window_bounds = array<i64: 8, 8>}, {pipeline_mode = #tpu.pipeline_mode<synchronous>, transform_indices = @transform_2, window_bounds = array<i64: 16, 256>}, {pipeline_mode = #tpu.pipeline_mode<synchronous>, transform_indices = @transform_3, window_bounds = array<i64: 8, 256>}, {pipeline_mode = #tpu.pipeline_mode<synchronous>, transform_indices = @transform_4, window_bounds = array<i64: 1, 256>}, {pipeline_mode = #tpu.pipeline_mode<synchronous>, transform_indices = @transform_5, window_bounds = array<i64: 256, 256>}, {pipeline_mode = #tpu.pipeline_mode<synchronous>, transform_indices = @transform_6, window_bounds = array<i64: 1, 256>}, {pipeline_mode = #tpu.pipeline_mode<synchronous>, transform_indices = @transform_7, window_bounds = array<i64: 1, 256>}, {transform_indices = @transform_8, window_bounds = array<i64: 1, 1>}, {transform_indices = @transform_9, window_bounds = array<i64: 8, 1>}]} {
    %c0 = arith.constant 0 : index
    %c0_0 = arith.constant 0 : index
    %0 = vector.load %arg1[%c0, %c0_0] : memref<8x16xf32, #tpu.memory_space<vmem>>, vector<8x16xf32>
    %c0_1 = arith.constant 0 : index
    %c0_2 = arith.constant 0 : index
    %1 = vector.load %arg3[%c0_1, %c0_2] : memref<16x256xf32, #tpu.memory_space<vmem>>, vector<16x256xf32>
    %cst = arith.constant dense<0.000000e+00> : vector<8x256xf32>
    %2 = tpu.matmul %0, %1, %cst {dimension_numbers = #tpu.dot_dimension_numbers<[1], [0], [0], [1], [0, 0, 1, 1], [], []>} : vector<8x16xf32>, vector<16x256xf32>, vector<8x256xf32> -> vector<8x256xf32>
    %c0_3 = arith.constant 0 : index
    %c0_4 = arith.constant 0 : index
    %3 = vector.load %arg2[%c0_3, %c0_4] : memref<8x8xf32, #tpu.memory_space<vmem>>, vector<8x8xf32>
    %c0_5 = arith.constant 0 : index
    %c0_6 = arith.constant 0 : index
    %4 = vector.load %arg4[%c0_5, %c0_6] : memref<8x256xf32, #tpu.memory_space<vmem>>, vector<8x256xf32>
    %cst_7 = arith.constant dense<0.000000e+00> : vector<8x256xf32>
    %5 = tpu.matmul %3, %4, %cst_7 {dimension_numbers = #tpu.dot_dimension_numbers<[1], [0], [0], [1], [0, 0, 1, 1], [], []>} : vector<8x8xf32>, vector<8x256xf32>, vector<8x256xf32> -> vector<8x256xf32>
    %6 = arith.addf %2, %5 : vector<8x256xf32>
    %c0_8 = arith.constant 0 : index
    %c0_9 = arith.constant 0 : index
    %7 = vector.load %arg5[%c0_8, %c0_9] : memref<1x256xf32, #tpu.memory_space<vmem>>, vector<1x256xf32>
    %8 = vector.broadcast %7 : vector<1x256xf32> to vector<8x256xf32>
    %9 = arith.addf %6, %8 : vector<8x256xf32>
    %cst_10 = arith.constant 0.000000e+00 : f32
    %10 = vector.broadcast %cst_10 : f32 to vector<8x256xf32>
    %11 = arith.maximumf %9, %10 : vector<8x256xf32>
    %c0_11 = arith.constant 0 : index
    %c0_12 = arith.constant 0 : index
    %12 = vector.load %arg6[%c0_11, %c0_12] : memref<256x256xf32, #tpu.memory_space<vmem>>, vector<256x256xf32>
    %cst_13 = arith.constant dense<0.000000e+00> : vector<8x256xf32>
    %13 = tpu.matmul %11, %12, %cst_13 {dimension_numbers = #tpu.dot_dimension_numbers<[1], [0], [0], [1], [0, 0, 1, 1], [], []>} : vector<8x256xf32>, vector<256x256xf32>, vector<8x256xf32> -> vector<8x256xf32>
    %c0_14 = arith.constant 0 : index
    %c0_15 = arith.constant 0 : index
    %14 = vector.load %arg7[%c0_14, %c0_15] : memref<1x256xf32, #tpu.memory_space<vmem>>, vector<1x256xf32>
    %15 = vector.broadcast %14 : vector<1x256xf32> to vector<8x256xf32>
    %16 = arith.addf %13, %15 : vector<8x256xf32>
    %cst_16 = arith.constant 0.000000e+00 : f32
    %17 = vector.broadcast %cst_16 : f32 to vector<8x256xf32>
    %18 = arith.maximumf %16, %17 : vector<8x256xf32>
    %c0_17 = arith.constant 0 : index
    %c0_18 = arith.constant 0 : index
    %19 = vector.load %arg8[%c0_17, %c0_18] : memref<1x256xf32, #tpu.memory_space<vmem>>, vector<1x256xf32>
    %20 = vector.broadcast %19 : vector<1x256xf32> to vector<8x256xf32>
    %21 = arith.mulf %18, %20 : vector<8x256xf32>
    %cst_19 = arith.constant dense<0.000000e+00> : vector<8xf32>
    %22 = vector.multi_reduction <add>, %21, %cst_19 [1] : vector<8x256xf32> to vector<8xf32>
    %23 = vector.shape_cast %22 : vector<8xf32> to vector<8x1xf32>
    %c0_20 = arith.constant 0 : index
    %c0_21 = arith.constant 0 : index
    %24 = memref.load %arg9[%c0_20, %c0_21] : memref<1x1xf32, #tpu.memory_space<smem>>
    %25 = vector.broadcast %24 : f32 to vector<8x1xf32>
    %26 = arith.addf %23, %25 : vector<8x1xf32>
    %c0_22 = arith.constant 0 : index
    %c0_23 = arith.constant 0 : index
    %27 = vector.load %arg10[%c0_22, %c0_23] : memref<8x1xf32, #tpu.memory_space<vmem>>, vector<8x1xf32>
    tpu.vector_store %arg10[%c0_22, %c0_23], %26 {strides = array<i32>} : memref<8x1xf32, #tpu.memory_space<vmem>>, vector<8x1xf32>,
    return
  }
  func.func @transform_0(%arg0: i32) -> (i32, i32) {
    %c0_i32 = arith.constant 0 : i32
    %c0_i32_0 = arith.constant 0 : i32
    return %arg0, %c0_i32 : i32, i32
  }
  func.func @transform_1(%arg0: i32) -> (i32, i32) {
    %c0_i32 = arith.constant 0 : i32
    %c0_i32_0 = arith.constant 0 : i32
    return %arg0, %c0_i32 : i32, i32
  }
  func.func @transform_2(%arg0: i32) -> (i32, i32) {
    %c0_i32 = arith.constant 0 : i32
    %c0_i32_0 = arith.constant 0 : i32
    %c0_i32_1 = arith.constant 0 : i32
    return %c0_i32, %c0_i32_0 : i32, i32
  }
  func.func @transform_3(%arg0: i32) -> (i32, i32) {
    %c0_i32 = arith.constant 0 : i32
    %c0_i32_0 = arith.constant 0 : i32
    %c0_i32_1 = arith.constant 0 : i32
    return %c0_i32, %c0_i32_0 : i32, i32
  }
  func.func @transform_4(%arg0: i32) -> (i32, i32) {
    %c0_i32 = arith.constant 0 : i32
    %c0_i32_0 = arith.constant 0 : i32
    %c0_i32_1 = arith.constant 0 : i32
    return %c0_i32, %c0_i32_0 : i32, i32
  }
  func.func @transform_5(%arg0: i32) -> (i32, i32) {
    %c0_i32 = arith.constant 0 : i32
    %c0_i32_0 = arith.constant 0 : i32
    %c0_i32_1 = arith.constant 0 : i32
    return %c0_i32, %c0_i32_0 : i32, i32
  }
  func.func @transform_6(%arg0: i32) -> (i32, i32) {
    %c0_i32 = arith.constant 0 : i32
    %c0_i32_0 = arith.constant 0 : i32
    %c0_i32_1 = arith.constant 0 : i32
    return %c0_i32, %c0_i32_0 : i32, i32
  }
  func.func @transform_7(%arg0: i32) -> (i32, i32) {
    %c0_i32 = arith.constant 0 : i32
    %c0_i32_0 = arith.constant 0 : i32
    %c0_i32_1 = arith.constant 0 : i32
    return %c0_i32, %c0_i32_0 : i32, i32
  }
  func.func @transform_8(%arg0: i32) -> (i32, i32) {
    %c0_i32 = arith.constant 0 : i32
    %c0_i32_0 = arith.constant 0 : i32
    %c0_i32_1 = arith.constant 0 : i32
    return %c0_i32, %c0_i32_0 : i32, i32
  }
  func.func @transform_9(%arg0: i32) -> (i32, i32) {
    %c0_i32 = arith.constant 0 : i32
    %c0_i32_0 = arith.constant 0 : i32
    return %arg0, %c0_i32 : i32, i32
  }
}

</mosaic_0001>

<bundles_post_ra>
// kernel: critic_forward.1
= control target key start
LH: loop header
LB: loop body
LE: loop exit
PB: predicated region body
PF: predicated region fallthrough
CT: control target
= control target key end

     0   :  { %15 = vsyncpa [#allocation4], 0  ;;  %s551_s0 = inlined_call_operand.vmem [shape: f32[8,16], index: 0, kind: input, shape index: {}]   ;;  %s552_s1 = inlined_call_operand.vmem [shape: f32[8,8], index: 1, kind: input, shape index: {}]   ;;  %s553_s2 = inlined_call_operand.hbm [shape: f32[16,256], index: 2, kind: input, shape index: {}]   ;;  %s554_s3 = inlined_call_operand.vmem [shape: f32[8,256], index: 3, kind: input, shape index: {}]   ;;  %s555_s4 = inlined_call_operand.vmem [shape: f32[1,256], index: 4, kind: input, shape index: {}]   ;;  %s556_s5 = inlined_call_operand.hbm [shape: f32[256,256], index: 5, kind: input, shape index: {}]   ;;  %s557_s6 = inlined_call_operand.vmem [shape: f32[1,256], index: 6, kind: input, shape index: {}]   ;;  %s558_s7 = inlined_call_operand.vmem [shape: f32[1,256], index: 7, kind: input, shape index: {}]   ;;  %s559_s8 = inlined_call_operand.<no memory space> [shape: f32[1,1], index: 8, kind: input, shape index: {}]   ;;  %s560_s9 = inlined_call_operand.vmem [shape: f32[8,1], index: 9, kind: output, shape index: {}]  }
   0x1   :  { %16 = vsyncpa [#allocation6], 0  ;;  %s463_s30 = smov [#allocation3]  }
   0x2   :  { %s26_s10 = sshll.u32 %s463_s30, 4  ;;  %s27_s10 = int_to_ptr.vmem [resolvable:$true] %s26_s10 }
   0x3   :  { %s427_s11 = scalar_lea.vmem %s27_s10, 512  ;;  %p432_p1 = scmp.lt.s32.totalorder %s27_s10, %s27_s10 }
   0x4   :  { %p428_p0 = scmp.ne.s32.totalorder %s27_s10, %s427_s11  ;;  %p433_p2 = scmp.lt.s32.totalorder %s427_s11, %s427_s11 }
   0x6   :  { %p434_p3 = por %p433_p2, %p432_p1 }
   0x8   :  { %p435_p4 = pnand %p434_p3, %p428_p0 }
   0xa   :  { %438 = shalt.err (!%p435_p4)
}
   0xb   :  { %s464_s12 = smov 256   ;;  %s465_s13 = smov 16  }
   0xc   :  { %32 = dma.hbm_to_vmem [thread:$0]  %s553_s2, 512, %s27_s10, [#allocation4], %s464_s12, %s464_s12, %s465_s13  }
   0xd   :  { %s466_s16 = smov [#allocation5]  }
   0xe   :  { %s42_s17 = sshll.u32 %s466_s16, 4  ;;  %s43_s17 = int_to_ptr.vmem [resolvable:$true] %s42_s17 }
   0xf   :  { %s447_s18 = scalar_lea.vmem %s43_s17, 8192  ;;  %p452_p6 = scmp.lt.s32.totalorder %s43_s17, %s43_s17 }
  0x10   :  { %p448_p5 = scmp.ne.s32.totalorder %s43_s17, %s447_s18  ;;  %p453_p7 = scmp.lt.s32.totalorder %s447_s18, %s447_s18 }
  0x12   :  { %p454_p8 = por %p453_p7, %p452_p6 }
  0x14   :  { %p455_p9 = pnand %p454_p8, %p448_p5 }
  0x16   :  { %458 = shalt.err (!%p455_p9)
}
  0x17   :  { %48 = dma.hbm_to_vmem [thread:$0]  %s556_s5, 8192, %s43_s17, [#allocation6], %s464_s12, %s464_s12, %s465_s13  }
  0x18   :  { %459 = dma.done.wait [#allocation4], 512  }
  0x19   :  { %460 = vsyncadd [#allocation4], 4294966784 }
  0x1a   :  { %461 = dma.done.wait [#allocation6], 8192  }
  0x1b   :  { %462 = vsyncadd [#allocation6], 4294959104  ;;  %v467_v0 = vmov 0.0   ;;  %v68_v1 = vld [vmem:[%s554_s3 + $0x8] sm:$0xff]  ;;  %v67_v2 = vld [vmem:[%s554_s3] sm:$0xff]  ;;  %vm69_vm0 = vcmask 64512  }
  0x1c   :  { %137 = vmatprep.mubr.f32.mxu1 %v467_v0  ;;  %v66_v3 = vld [vmem:[%s552_s1] sm:$0xff]  ;;  %103 = vmatprep.subr.mxu1 %v68_v1  ;;  %v65_v4 = vld [vmem:[#allocation3 + $0x18] sm:$0xff]  ;;  %v64_v5 = vld [vmem:[#allocation3 + $0x10] sm:$0xff]  ;;  %vm144_vm1 = vcmask 130048   ;;  %vm404_vm2 = vcmask 7168  }
  0x1d   :  { %104 = vmatpush1.msra.mxu1 %v67_v2  ;;  %v63_v6 = vld [vmem:[#allocation3 + $0x8] sm:$0xff]  ;;  %v266_v7 = vld [vmem:[#allocation5 + $0xf8] sm:$0xff]  ;;  %v62_v8 = vld [vmem:[#allocation3] sm:$0xff] }
  0x1e   :  { %412 = vmatmul.mubr.msk.f32.vlgmr.msra.gmra.mxu1 %vm69_vm0, %v66_v3  ;;  %176 = vmatprep.subr.mxu1 %v65_v4  ;;  %v265_v9 = vld [vmem:[#allocation5 + $0xf0] sm:$0xff]  ;;  %v61_v10 = vld [vmem:[%s551_s0] sm:$0xff]  ;;  %v264_v11 = vld [vmem:[#allocation5 + $0xe8] sm:$0xff] }
  0x1f   :  { %177 = vmatpush1.msra.mxu1 %v64_v5  ;;  %212 = vmatprep.mubr.f32.mxu1 %v467_v0  ;;  %v263_v12 = vld [vmem:[#allocation5 + $0xe0] sm:$0xff]  ;;  %v262_v13 = vld [vmem:[#allocation5 + $0xd8] sm:$0xff]  ;;  %v261_v14 = vld [vmem:[#allocation5 + $0xd0] sm:$0xff] }
  0x20   :  { %178 = vmatprep.subr.mxu1 %v63_v6  ;;  %311 = vmatprep.subr.mxu0 %v266_v7  ;;  %v260_v15 = vld [vmem:[#allocation5 + $0xc8] sm:$0xff]  ;;  %v259_v16 = vld [vmem:[#allocation5 + $0xc0] sm:$0xff]  ;;  %v258_v17 = vld [vmem:[#allocation5 + $0xb8] sm:$0xff] }
  0x21   :  { %179 = vmatpush1.msra.mxu1 %v62_v8  ;;  %312 = vmatpush1.msra.mxu0 %v265_v9  ;;  %v257_v18 = vld [vmem:[#allocation5 + $0xb0] sm:$0xff]  ;;  %v256_v19 = vld [vmem:[#allocation5 + $0xa8] sm:$0xff]  ;;  %v255_v20 = vld [vmem:[#allocation5 + $0xa0] sm:$0xff]  ;;  %v221_v9 = vlaneseq }
  0x22   :  { %413 = vmatmul.mubr.msk.f32.vlgmr.msra.gmra.mxu1 %vm144_vm1, %v61_v10  ;;  %313 = vmatprep.subr.mxu0 %v264_v11  ;;  %v254_v21 = vld [vmem:[#allocation5 + $0x98] sm:$0xff]  ;;  %v253_v22 = vld [vmem:[#allocation5 + $0x90] sm:$0xff]  ;;  %v252_v23 = vld [vmem:[#allocation5 + $0x88] sm:$0xff] }
  0x23   :  { %314 = vmatpush1.msra.mxu0 %v263_v12  ;;  %v251_v24 = vld [vmem:[#allocation5 + $0x80] sm:$0xff]  ;;  %v250_v25 = vld [vmem:[#allocation5 + $0x78] sm:$0xff]  ;;  %v249_v26 = vld [vmem:[#allocation5 + $0x70] sm:$0xff]  ;;  %v222_v10 = vshrl.u32 %v221_v9, 7 }
  0x24   :  { %315 = vmatprep.subr.mxu0 %v262_v13  ;;  %v248_v27 = vld [vmem:[#allocation5 + $0x68] sm:$0xff]  ;;  %v247_v28 = vld [vmem:[#allocation5 + $0x60] sm:$0xff]  ;;  %v246_v29 = vld [vmem:[#allocation5 + $0x58] sm:$0xff] }
  0x25   :  { %316 = vmatpush1.msra.mxu0 %v261_v14  ;;  %v245_v30 = vld [vmem:[#allocation5 + $0x50] sm:$0xff]  ;;  %v244_v31 = vld [vmem:[#allocation5 + $0x48] sm:$0xff]  ;;  %v243_v32 = vld [vmem:[#allocation5 + $0x40] sm:$0xff]  ;;  %v223_v12 = vsub.s32 0, %v222_v10  ;;  %v227_v14 = vsub.s32 1, %v222_v10 }
  0x26   :  { %317 = vmatprep.subr.mxu0 %v260_v15  ;;  %v242_v33 = vld [vmem:[#allocation5 + $0x38] sm:$0xff]  ;;  %v241_v34 = vld [vmem:[#allocation5 + $0x30] sm:$0xff]  ;;  %v240_v35 = vld [vmem:[#allocation5 + $0x28] sm:$0xff] }
  0x27   :  { %318 = vmatpush1.msra.mxu0 %v259_v16  ;;  %v239_v36 = vld [vmem:[#allocation5 + $0x20] sm:$0xff]  ;;  %v238_v37 = vld [vmem:[#allocation5 + $0x18] sm:$0xff]  ;;  %v237_v38 = vld [vmem:[#allocation5 + $0x10] sm:$0xff] }
  0x28   :  { %319 = vmatprep.subr.mxu0 %v258_v17  ;;  %v236_v39 = vld [vmem:[#allocation5 + $0x8] sm:$0xff]  ;;  %v235_v40 = vld [vmem:[#allocation5] sm:$0xff]  ;;  %v298_v41 = vld [vmem:[#allocation5 + $0x1f8] sm:$0xff] }
  0x29   :  { %320 = vmatpush1.msra.mxu0 %v257_v18  ;;  %v297_v42 = vld [vmem:[#allocation5 + $0x1f0] sm:$0xff]  ;;  %v296_v43 = vld [vmem:[#allocation5 + $0x1e8] sm:$0xff]  ;;  %v295_v44 = vld [vmem:[#allocation5 + $0x1e0] sm:$0xff] }
  0x2a   :  { %321 = vmatprep.subr.mxu0 %v256_v19  ;;  %v294_v45 = vld [vmem:[#allocation5 + $0x1d8] sm:$0xff]  ;;  %v293_v46 = vld [vmem:[#allocation5 + $0x1d0] sm:$0xff]  ;;  %v292_v47 = vld [vmem:[#allocation5 + $0x1c8] sm:$0xff] }
  0x2b   :  { %322 = vmatpush1.msra.mxu0 %v255_v20  ;;  %v291_v48 = vld [vmem:[#allocation5 + $0x1c0] sm:$0xff]  ;;  %v290_v49 = vld [vmem:[#allocation5 + $0x1b8] sm:$0xff]  ;;  %v289_v50 = vld [vmem:[#allocation5 + $0x1b0] sm:$0xff] }
  0x2c   :  { %323 = vmatprep.subr.mxu0 %v254_v21  ;;  %v288_v51 = vld [vmem:[#allocation5 + $0x1a8] sm:$0xff]  ;;  %v287_v52 = vld [vmem:[#allocation5 + $0x1a0] sm:$0xff]  ;;  %v286_v53 = vld [vmem:[#allocation5 + $0x198] sm:$0xff] }
  0x2d   :  { %324 = vmatpush1.msra.mxu0 %v253_v22  ;;  %v285_v54 = vld [vmem:[#allocation5 + $0x190] sm:$0xff]  ;;  %v284_v55 = vld [vmem:[#allocation5 + $0x188] sm:$0xff]  ;;  %v283_v56 = vld [vmem:[#allocation5 + $0x180] sm:$0xff] }
  0x2e   :  { %325 = vmatprep.subr.mxu0 %v252_v23  ;;  %v282_v57 = vld [vmem:[#allocation5 + $0x178] sm:$0xff]  ;;  %v281_v58 = vld [vmem:[#allocation5 + $0x170] sm:$0xff]  ;;  %v280_v59 = vld [vmem:[#allocation5 + $0x168] sm:$0xff] }
  0x2f   :  { %326 = vmatpush1.msra.mxu0 %v251_v24  ;;  %v279_v60 = vld [vmem:[#allocation5 + $0x160] sm:$0xff]  ;;  %v278_v61 = vld [vmem:[#allocation5 + $0x158] sm:$0xff]  ;;  %v277_v62 = vld [vmem:[#allocation5 + $0x150] sm:$0xff] }
  0x30   :  { %327 = vmatprep.subr.mxu0 %v250_v25  ;;  %v276_v63 = vld [vmem:[#allocation5 + $0x148] sm:$0xff]  ;;  %v275_v0 = vld [vmem:[#allocation5 + $0x140] sm:$0xff]  ;;  %v274_v1 = vld [vmem:[#allocation5 + $0x138] sm:$0xff] }
  0x31   :  { %328 = vmatpush1.msra.mxu0 %v249_v26  ;;  %v273_v2 = vld [vmem:[#allocation5 + $0x130] sm:$0xff]  ;;  %v272_v3 = vld [vmem:[#allocation5 + $0x128] sm:$0xff]  ;;  %v271_v4 = vld [vmem:[#allocation5 + $0x120] sm:$0xff] }
  0x32   :  { %329 = vmatprep.subr.mxu0 %v248_v27  ;;  %v270_v5 = vld [vmem:[#allocation5 + $0x118] sm:$0xff]  ;;  %v269_v6 = vld [vmem:[#allocation5 + $0x110] sm:$0xff]  ;;  %v268_v7 = vld [vmem:[#allocation5 + $0x108] sm:$0xff] }
  0x33   :  { %330 = vmatpush1.msra.mxu0 %v247_v28  ;;  %v267_v8 = vld [vmem:[#allocation5 + $0x100] sm:$0xff] }
  0x34   :  { %331 = vmatprep.subr.mxu0 %v246_v29  ;;  %v219_v13 = vld [vmem:[%s555_s4] sm:$0x3] }
  0x35   :  { %332 = vmatpush1.msra.mxu0 %v245_v30  ;;  %v224_v17 = vrot.slane %v219_v13, %v223_v12  ;;  %v228_v19 = vrot.slane %v219_v13, %v227_v14  ;;  %v299_v26 = vld [vmem:[%s557_s6] sm:$0x3] }
  0x36   :  { %333 = vmatprep.subr.mxu0 %v244_v31  ;;  %v304_v27 = vrot.slane %v299_v26, %v223_v12  ;;  %v308_v28 = vrot.slane %v299_v26, %v227_v14  ;;  %v384_v30 = vld [vmem:[%s558_s7] sm:$0x3] }
  0x37   :  { %334 = vmatpush1.msra.mxu0 %v243_v32 }
  0x38   :  { %335 = vmatprep.subr.mxu0 %v242_v33 }
  0x39   :  { %336 = vmatpush1.msra.mxu0 %v241_v34 }
  0x3a   :  { %337 = vmatprep.subr.mxu0 %v240_v35  ;;  %v389_v35 = vrot.slane %v384_v30, %v223_v12 }
  0x3b   :  { %338 = vmatpush1.msra.mxu0 %v239_v36  ;;  %v393_v36 = vrot.slane %v384_v30, %v227_v14 }
  0x3c   :  { %339 = vmatprep.subr.mxu0 %v238_v37 }
  0x3d   :  { %340 = vmatpush1.msra.mxu0 %v237_v38 }
  0x3e   :  { %341 = vmatprep.subr.mxu0 %v236_v39 }
  0x3f   :  { %342 = vmatpush1.msra.mxu0 %v235_v40 }
  0x40   :  { %343 = vmatprep.subr.mxu0 %v298_v41  ;;  %v402_v41 = vstv %s559_s8 }
  0x41   :  { %344 = vmatpush2.msra.mxu0 %v297_v42 }
  0x42   :  { %345 = vmatprep.subr.mxu0 %v296_v43 }
  0x43   :  { %346 = vmatpush2.msra.mxu0 %v295_v44 }
  0x44   :  { %347 = vmatprep.subr.mxu0 %v294_v45 }
  0x45   :  { %348 = vmatpush2.msra.mxu0 %v293_v46 }
  0x46   :  { %349 = vmatprep.subr.mxu0 %v292_v47 }
  0x47   :  { %350 = vmatpush2.msra.mxu0 %v291_v48 }
  0x48   :  { %351 = vmatprep.subr.mxu0 %v290_v49 }
  0x49   :  { %352 = vmatpush2.msra.mxu0 %v289_v50 }
  0x4a   :  { %353 = vmatprep.subr.mxu0 %v288_v51 }
  0x4b   :  { %354 = vmatpush2.msra.mxu0 %v287_v52 }
  0x4c   :  { %355 = vmatprep.subr.mxu0 %v286_v53 }
  0x4d   :  { %356 = vmatpush2.msra.mxu0 %v285_v54 }
  0x4e   :  { %357 = vmatprep.subr.mxu0 %v284_v55 }
  0x4f   :  { %358 = vmatpush2.msra.mxu0 %v283_v56 }
  0x50   :  { %359 = vmatprep.subr.mxu0 %v282_v57 }
  0x51   :  { %360 = vmatpush2.msra.mxu0 %v281_v58 }
  0x52   :  { %361 = vmatprep.subr.mxu0 %v280_v59 }
  0x53   :  { %362 = vmatpush2.msra.mxu0 %v279_v60 }
  0x54   :  { %363 = vmatprep.subr.mxu0 %v278_v61 }
  0x55   :  { %364 = vmatpush2.msra.mxu0 %v277_v62 }
  0x56   :  { %365 = vmatprep.subr.mxu0 %v276_v63 }
  0x57   :  { %366 = vmatpush2.msra.mxu0 %v275_v0 }
  0x58   :  { %367 = vmatprep.subr.mxu0 %v274_v1 }
  0x59   :  { %368 = vmatpush2.msra.mxu0 %v273_v2 }
  0x5a   :  { %369 = vmatprep.subr.mxu0 %v272_v3 }
  0x5b   :  { %370 = vmatpush2.msra.mxu0 %v271_v4 }
  0x5c   :  { %371 = vmatprep.subr.mxu0 %v270_v5 }
  0x5d   :  { %372 = vmatpush2.msra.mxu0 %v269_v6 }
  0x5e   :  { %373 = vmatprep.subr.mxu0 %v268_v7 }
  0x5f   :  { %374 = vmatpush2.msra.mxu0 %v267_v8 }
  0xde   :  { %v139_v11 = vpop.f32.mrf.mxu1 }
  0xe0   :  { %v141_v15 = vpop.f32.mrf.mxu1 }
  0xe2   :  { %v214_v16 = vpop.f32.mrf.mxu1 }
  0xe3   :  { %v215_v18 = vadd.f32 %v214_v16, %v139_v11 }
  0xe4   :  { %v216_v20 = vpop.f32.mrf.mxu1 }
  0xe5   :  { %v217_v21 = vadd.f32 %v216_v20, %v141_v15  ;;  %v231_v22 = vadd.f32 %v224_v17, %v215_v18 }
  0xe7   :  { %v232_v23 = vadd.f32 %v228_v19, %v217_v21  ;;  %v233_v25 = vmax.f32 %v231_v22, 0.0 }
  0xe9   :  { %v234_v24 = vmax.f32 %v232_v23, 0.0 }
  0xeb   :  { %375 = vmatprep.mubr.f32.mxu0 %v234_v24 }
  0xec   :  { %376 = vmatmul.mubr.f32.vlgmr.msra.gmra.mxu0 %v233_v25 }
 0x1ac   :  { %v377_v29 = vpop.f32.mrf.mxu0 }
 0x1ad   :  { %v378_v31 = vadd.f32 %v377_v29, %v304_v27 }
 0x1ae   :  { %v379_v32 = vpop.f32.mrf.mxu0 }
 0x1af   :  { %v382_v33 = vmax.f32 %v378_v31, 0.0  ;;  %v380_v34 = vadd.f32 %v379_v32, %v308_v28 }
 0x1b1   :  { %v383_v37 = vmax.f32 %v380_v34, 0.0  ;;  %v396_v38 = vmul.f32 %v389_v35, %v382_v33 }
 0x1b3   :  { %v397_v39 = vmul.f32 %v393_v36, %v383_v37 }
 0x1b5   :  { %v398_v40 = vadd.f32 %v397_v39, %v396_v38 }
 0x1b7   :  { %399 = vadd.xlane.f32.xlu0 %v398_v40 }
 0x240   :  { %v400_v42 = vpop.xlane.xlu0 %399 }
 0x241   :  { %v403_v43 = vadd.f32 %v402_v41, %v400_v42 }
 0x243   :  { %405 = vst.msk [vmem:[%s560_s9] sm:$0xff] %vm404_vm2, %v403_v43 }
 0x244   :  { %410 = vsyncpa [#allocation4], 1 }
 0x245   :  { %411 = vsyncpa [#allocation6], 1 }

</bundles_post_ra>
